<compile_context>
chip_gen: v5e
topology: v5e:2x2
jax: 0.10.0
libtpu: 0.0.40
codegen_flags: <defaults>
</compile_context>

<pallas_src>
import functools

import jax
import jax.numpy as jnp
from jax import lax
from jax.experimental import pallas as pl
from jax.experimental.pallas import tpu as pltpu

_EPS = 1e-9
_IGNORE_INDEX = -100


def _round_up(x, m):
    return (x + m - 1) // m * m


def _gce_kernel(logits_ref, targets_ref, scale_ref, loss_ref, *, q):
    """One row tile of GCE.

    logits_ref : (T, C)      native dtype (rows on sublanes, classes on lanes)
    targets_ref: (T, 1)      int32
    scale_ref  : (1, 1, T)   f32  = weight[target] * (target != ignore_index)
    loss_ref   : (1, 1, T)   f32  lane-dense per-sample loss
    """
    x = logits_ref[...].astype(jnp.float32)               # (T, C)
    tgt = targets_ref[...]                                 # (T, 1) int32
    t, c = x.shape

    # --- softmax pieces (probs never materialized) ---
    m = jnp.max(x, axis=1, keepdims=True)                  # (T, 1)  XLU max
    e = jnp.exp(x - m)                                      # (T, C)  EUP

    col = lax.broadcasted_iota(jnp.int32, (t, c), 1)
    masked_e = jnp.where(col == tgt, e, 0.0)                # one-hot gather of exp

    # Row-major reductions on the MXU:  ones(8,C) . E(T,C)^T -> (8,T); row 0 used.
    ones_lhs = jnp.ones((8, c), dtype=jnp.float32)
    dims = (((1,), (1,)), ((), ()))                         # contract class axis of both
    denom = lax.dot_general(ones_lhs, e, dims,
                            preferred_element_type=jnp.float32)[0:1, :]       # (1, T)
    p_true = lax.dot_general(ones_lhs, masked_e, dims,
                             preferred_element_type=jnp.float32)[0:1, :]      # (1, T)

    p = p_true * pl.reciprocal(denom, approx=False)         # reciprocal only on (1, T)
    p = jnp.clip(p, _EPS, 1.0 - _EPS)

    # --- GCE transform (q is a static Python float -> static branch) ---
    if abs(q) < _EPS:
        gce = -jnp.log(p)
    elif abs(q - 1.0) < _EPS:
        gce = 1.0 - p
    else:
        gce = (1.0 - jnp.power(p, q)) / q

    scale = scale_ref[...].reshape(1, t)                     # weight * valid mask
    loss_ref[...] = (gce * scale).reshape(1, 1, t)


def gce_loss(logits, targets, *, q=0.7, weight=None,
             ignore_index=_IGNORE_INDEX, reduction="mean", tile_n=None):
    """Pallas implementation of GCELoss.forward.

    logits:  (N, C) float32 / bfloat16
    targets: (N,)   int
    weight:  optional (C,) class weights
    """
    if q < 0:
        raise ValueError(f"GCE q parameter {q} must be non-negative.")
    n, c = logits.shape
    targets = targets.astype(jnp.int32)

    # Per-sample scale: class weight gathered at the target, zeroed for
    # ignore_index rows.  Tiny XLA gather (over an (N,) index) in the wrapper.
    valid = targets != ignore_index
    if weight is not None:
        safe_t = jnp.where(valid, targets, 0)
        w = weight.astype(jnp.float32)[safe_t]
    else:
        w = jnp.ones((n,), dtype=jnp.float32)
    scale = jnp.where(valid, w, 0.0)                          # (N,)

    # --- row tiling: biggest lane-friendly tile whose f32 working set
    # double-buffers comfortably within the scoped-VMEM budget. ---
    if tile_n is None:
        budget_elems = 512 * 1024                             # ~2 MiB f32 per (T, C) tile
        tile_n = budget_elems // max(c, 1)
    tile_n = max(8, min(int(tile_n), 2048))
    if tile_n >= 128:
        tile_n = tile_n // 128 * 128                          # unmasked lane-dense stores
        tile_n = min(tile_n, _round_up(n, 128))
    else:
        tile_n = tile_n // 8 * 8
        tile_n = min(tile_n, _round_up(n, 8))
    num_tiles = pl.cdiv(n, tile_n)
    n_pad = num_tiles * tile_n

    # Logits and targets are passed UNPADDED: the trailing partial block reads
    # out-of-bounds rows whose (garbage) losses are sliced away below.  Only
    # the tiny (N,) scale vector is padded (so the loss output stays exactly 0
    # for padded rows is not needed -- they are discarded anyway).
    targets_in = targets.reshape(n, 1)
    scale_p = jnp.pad(scale, (0, n_pad - n)).reshape(num_tiles, 1, tile_n)

    kernel = functools.partial(_gce_kernel, q=float(q))

    itemsize = jnp.dtype(logits.dtype).itemsize
    cost = pl.CostEstimate(
        flops=int(38 * n * c),
        transcendentals=int(n * c + 3 * n),
        bytes_accessed=int(n * c * itemsize + 3 * 4 * n),
    )

    loss_rows = pl.pallas_call(
        kernel,
        out_shape=jax.ShapeDtypeStruct((num_tiles, 1, tile_n), jnp.float32),
        grid=(num_tiles,),
        in_specs=[
            pl.BlockSpec((tile_n, c), lambda i: (i, 0)),        # logits (native dtype)
            pl.BlockSpec((tile_n, 1), lambda i: (i, 0)),        # targets
            pl.BlockSpec((1, 1, tile_n), lambda i: (i, 0, 0)),  # per-sample scale
        ],
        out_specs=pl.BlockSpec((1, 1, tile_n), lambda i: (i, 0, 0)),
        compiler_params=pltpu.CompilerParams(
            dimension_semantics=("parallel",),
            vmem_limit_bytes=32 * 1024 * 1024,
        ),
        cost_estimate=cost,
    )(logits, targets_in, scale_p)

    loss_per_sample = loss_rows.reshape(n_pad)[:n]

    if reduction == "none":
        return loss_per_sample.astype(logits.dtype)
    loss_sum = jnp.sum(loss_per_sample)
    if reduction == "sum":
        return loss_sum
    if reduction == "mean":
        cnt = jnp.sum(valid.astype(jnp.float32))
        return jnp.where(cnt > 0, loss_sum / jnp.maximum(cnt, 1.0), 0.0)
    raise ValueError(f"Unsupported reduction type: {reduction}")


def _gce_ref(logits, targets, *, q=0.7, weight=None,
             ignore_index=_IGNORE_INDEX, reduction="mean"):
    """Pure-JAX reference mirroring the PyTorch module semantics."""
    probs = jax.nn.softmax(logits.astype(jnp.float32), axis=1)
    valid = targets != ignore_index
    safe_t = jnp.where(valid, targets, 0)
    p_true = jnp.take_along_axis(probs, safe_t[:, None], axis=1)[:, 0]
    p_c = jnp.clip(p_true, _EPS, 1.0 - _EPS)
    if abs(q) < _EPS:
        vals = -jnp.log(p_c)
    elif abs(q - 1.0) < _EPS:
        vals = 1.0 - p_c
    else:
        vals = (1.0 - jnp.power(p_c, q)) / q
    if weight is not None:
        vals = vals * weight[safe_t]
    loss = jnp.where(valid, vals, 0.0)
    if reduction == "mean":
        cnt = jnp.sum(valid)
        return jnp.where(cnt > 0, jnp.sum(loss) / jnp.maximum(cnt, 1), 0.0)
    elif reduction == "sum":
        return jnp.sum(loss)
    return loss


if __name__ == "__main__":
    key = jax.random.PRNGKey(0)
    k1, k2, k3, k4 = jax.random.split(key, 4)

    # Case 1: small single-tile (N < tile), with class weights + ignored rows.
    N1, C1 = 8, 32
    logits1 = jax.random.normal(k1, (N1, C1), dtype=jnp.float32)
    targets1 = jax.random.randint(k2, (N1,), 0, C1, dtype=jnp.int32)
    targets1 = targets1.at[1].set(_IGNORE_INDEX).at[5].set(_IGNORE_INDEX)
    weight1 = 1.0 + jnp.arange(C1, dtype=jnp.float32) / C1

    out_mean = gce_loss(logits1, targets1, q=0.7, weight=weight1, reduction="mean")
    out_none = gce_loss(logits1, targets1, q=0.7, weight=weight1, reduction="none")
    jax.block_until_ready((out_mean, out_none))
    ref_mean = _gce_ref(logits1, targets1, q=0.7, weight=weight1, reduction="mean")
    ref_none = _gce_ref(logits1, targets1, q=0.7, weight=weight1, reduction="none")
    assert jnp.allclose(out_mean, ref_mean, rtol=1e-5, atol=1e-6), (out_mean, ref_mean)
    assert jnp.allclose(out_none, ref_none, rtol=1e-5, atol=1e-6)

    # Case 2: multi-tile grid with a partial (OOB-reading) trailing block
    # (N not a multiple of tile_n), no class weights, 'sum' and 'none'.
    N2, C2 = 200, 64
    logits2 = jax.random.normal(k3, (N2, C2), dtype=jnp.float32)
    targets2 = jax.random.randint(k4, (N2,), 0, C2, dtype=jnp.int32)
    targets2 = targets2.at[7].set(_IGNORE_INDEX).at[100].set(_IGNORE_INDEX)

    out_sum = gce_loss(logits2, targets2, q=0.7, reduction="sum", tile_n=64)
    out_none2 = gce_loss(logits2, targets2, q=0.7, reduction="none", tile_n=64)
    jax.block_until_ready((out_sum, out_none2))
    ref_sum = _gce_ref(logits2, targets2, q=0.7, reduction="sum")
    ref_none2 = _gce_ref(logits2, targets2, q=0.7, reduction="none")
    assert jnp.allclose(out_sum, ref_sum, rtol=1e-5, atol=1e-4), (out_sum, ref_sum)
    assert jnp.allclose(out_none2, ref_none2, rtol=1e-5, atol=1e-6)

    # Case 3: bf16 logits on the default tile heuristic, 'mean'.
    logits3 = logits2.astype(jnp.bfloat16)
    out_mean3 = gce_loss(logits3, targets2, q=0.7, reduction="mean")
    jax.block_until_ready(out_mean3)
    ref_mean3 = _gce_ref(logits3, targets2, q=0.7, reduction="mean")
    assert jnp.allclose(out_mean3, ref_mean3, rtol=2e-2, atol=2e-3), (out_mean3, ref_mean3)

    print("KERNEL_OK")
</pallas_src>

<mosaic_0001>
module attributes {stable_mosaic.version = 11 : i64} {
  func.func @_gce_kernel(%arg0: i32, %arg1: memref<128x32xf32, #tpu.memory_space<vmem>>, %arg2: memref<128x1xi32, #tpu.memory_space<vmem>>, %arg3: memref<1x1x128xf32, #tpu.memory_space<vmem>>, %arg4: memref<1x1x128xf32, #tpu.memory_space<vmem>>) attributes {dimension_semantics = [#tpu.dimension_semantics<parallel>], iteration_bounds = array<i64: 1>, scalar_prefetch = 0 : i64, scratch_operands = 0 : i64, tpu.core_type = #tpu.core_type<tc>, window_params = [{transform_indices = @transform_0, window_bounds = array<i64: 128, 32>}, {transform_indices = @transform_1, window_bounds = array<i64: 128, 1>}, {transform_indices = @transform_2, window_bounds = array<i64: 1, 1, 128>}, {transform_indices = @transform_3, window_bounds = array<i64: 1, 1, 128>}]} {
    %c0 = arith.constant 0 : index
    %c0_0 = arith.constant 0 : index
    %0 = vector.load %arg1[%c0, %c0_0] : memref<128x32xf32, #tpu.memory_space<vmem>>, vector<128x32xf32>
    %c0_1 = arith.constant 0 : index
    %c0_2 = arith.constant 0 : index
    %1 = vector.load %arg2[%c0_1, %c0_2] : memref<128x1xi32, #tpu.memory_space<vmem>>, vector<128x1xi32>
    %cst = arith.constant dense<0xFF800000> : vector<128xf32>
    %2 = vector.multi_reduction <maximumf>, %0, %cst [1] : vector<128x32xf32> to vector<128xf32>
    %3 = vector.shape_cast %2 : vector<128xf32> to vector<128x1xf32>
    %4 = vector.broadcast %3 : vector<128x1xf32> to vector<128x32xf32>
    %5 = arith.subf %0, %4 : vector<128x32xf32>
    %6 = math.exp %5 : vector<128x32xf32>
    %7 = tpu.iota {dimensions = array<i32: 1>} : vector<128x32xi32>
    %8 = vector.broadcast %1 : vector<128x1xi32> to vector<128x32xi32>
    %9 = arith.cmpi eq, %7, %8 : vector<128x32xi32>
    %cst_3 = arith.constant 0.000000e+00 : f32
    %10 = vector.broadcast %cst_3 : f32 to vector<128x32xf32>
    %11 = arith.select %9, %6, %10 : vector<128x32xi1>, vector<128x32xf32>
    %cst_4 = arith.constant 1.000000e+00 : f32
    %12 = vector.broadcast %cst_4 : f32 to vector<8x32xf32>
    %cst_5 = arith.constant dense<0.000000e+00> : vector<8x128xf32>
    %13 = tpu.matmul %12, %6, %cst_5 {dimension_numbers = #tpu.dot_dimension_numbers<[1], [1], [0], [0], [0, 0, 1, 0], [], []>} : vector<8x32xf32>, vector<128x32xf32>, vector<8x128xf32> -> vector<8x128xf32>
    %14 = vector.extract_strided_slice %13 {offsets = [0, 0], sizes = [1, 128], strides = [1, 1]} : vector<8x128xf32> to vector<1x128xf32>
    %cst_6 = arith.constant dense<0.000000e+00> : vector<8x128xf32>
    %15 = tpu.matmul %12, %11, %cst_6 {dimension_numbers = #tpu.dot_dimension_numbers<[1], [1], [0], [0], [0, 0, 1, 0], [], []>} : vector<8x32xf32>, vector<128x32xf32>, vector<8x128xf32> -> vector<8x128xf32>
    %16 = vector.extract_strided_slice %15 {offsets = [0, 0], sizes = [1, 128], strides = [1, 1]} : vector<8x128xf32> to vector<1x128xf32>
    %17 = tpu.reciprocal %14 : vector<1x128xf32> -> vector<1x128xf32>
    %18 = arith.mulf %16, %17 : vector<1x128xf32>
    %cst_7 = arith.constant 9.99999971E-10 : f32
    %cst_8 = arith.constant 1.000000e+00 : f32
    %19 = vector.broadcast %cst_7 : f32 to vector<1x128xf32>
    %20 = arith.maximumf %19, %18 : vector<1x128xf32>
    %21 = vector.broadcast %cst_8 : f32 to vector<1x128xf32>
    %22 = arith.minimumf %21, %20 : vector<1x128xf32>
    %cst_9 = arith.constant 0.699999988 : f32
    %23 = vector.broadcast %cst_9 : f32 to vector<1x128xf32>
    %24 = math.powf %22, %23 : vector<1x128xf32>
    %cst_10 = arith.constant 1.000000e+00 : f32
    %25 = vector.broadcast %cst_10 : f32 to vector<1x128xf32>
    %26 = arith.subf %25, %24 : vector<1x128xf32>
    %cst_11 = arith.constant 0.699999988 : f32
    %27 = vector.broadcast %cst_11 : f32 to vector<1x128xf32>
    %28 = arith.divf %26, %27 : vector<1x128xf32>
    %c0_12 = arith.constant 0 : index
    %c0_13 = arith.constant 0 : index
    %c0_14 = arith.constant 0 : index
    %29 = vector.load %arg3[%c0_12, %c0_13, %c0_14] : memref<1x1x128xf32, #tpu.memory_space<vmem>>, vector<1x1x128xf32>
    %30 = vector.shape_cast %29 : vector<1x1x128xf32> to vector<1x128xf32>
    %31 = arith.mulf %28, %30 : vector<1x128xf32>
    %32 = vector.shape_cast %31 : vector<1x128xf32> to vector<1x1x128xf32>
    %c0_15 = arith.constant 0 : index
    %c0_16 = arith.constant 0 : index
    %c0_17 = arith.constant 0 : index
    %33 = vector.load %arg4[%c0_15, %c0_16, %c0_17] : memref<1x1x128xf32, #tpu.memory_space<vmem>>, vector<1x1x128xf32>
    tpu.vector_store %arg4[%c0_15, %c0_16, %c0_17], %32 {strides = array<i32>} : memref<1x1x128xf32, #tpu.memory_space<vmem>>, vector<1x1x128xf32>,
    return
  }
  func.func @transform_0(%arg0: i32) -> (i32, i32) {
    %c0_i32 = arith.constant 0 : i32
    %c0_i32_0 = arith.constant 0 : i32
    return %arg0, %c0_i32 : i32, i32
  }
  func.func @transform_1(%arg0: i32) -> (i32, i32) {
    %c0_i32 = arith.constant 0 : i32
    %c0_i32_0 = arith.constant 0 : i32
    return %arg0, %c0_i32 : i32, i32
  }
  func.func @transform_2(%arg0: i32) -> (i32, i32, i32) {
    %c0_i32 = arith.constant 0 : i32
    %c0_i32_0 = arith.constant 0 : i32
    %c0_i32_1 = arith.constant 0 : i32
    return %arg0, %c0_i32, %c0_i32_0 : i32, i32, i32
  }
  func.func @transform_3(%arg0: i32) -> (i32, i32, i32) {
    %c0_i32 = arith.constant 0 : i32
    %c0_i32_0 = arith.constant 0 : i32
    %c0_i32_1 = arith.constant 0 : i32
    return %arg0, %c0_i32, %c0_i32_0 : i32, i32, i32
  }
}

</mosaic_0001>

<bundles_post_ra>
// kernel: tpu_custom_call.1
= control target key start
LH: loop header
LB: loop body
LE: loop exit
PB: predicated region body
PF: predicated region fallthrough
CT: control target
= control target key end

     0   :  { %vm47_vm0 = vcmask 261120   ;;  %v587_v9 = vmov 0   ;;  %s875_s0 = inlined_call_operand.vmem [shape: f32[8,32], index: 0, kind: input, shape index: {}]   ;;  %s876_s1 = inlined_call_operand.vmem [shape: s32[8,1], index: 1, kind: input, shape index: {}]   ;;  %s877_s2 = inlined_call_operand.vmem [shape: f32[1,1,128], index: 2, kind: input, shape index: {}]   ;;  %s878_s3 = inlined_call_operand.hbm [shape: f32[1,1,128], index: 3, kind: output, shape index: {}]  }
   0x1   :  { %v614_v0 = vld [vmem:[%s875_s0 + $0x78] sm:$0xff]  ;;  %v619_v1 = vld [vmem:[%s875_s0 + $0x68] sm:$0xff]  ;;  %v635_v6 = vld [vmem:[%s875_s0 + $0x70] sm:$0xff]  ;;  %520 = vset.pattern.permute.xlu1 %v587_v9  ;;  %521 = vset.pattern.permute.xlu0 %v587_v9 }
   0x2   :  { %v624_v2 = vld [vmem:[%s875_s0 + $0x58] sm:$0xff]  ;;  %v93_v3 = vsel %vm47_vm0, %v614_v0, -inf  ;;  %v87_v4 = vsel %vm47_vm0, %v619_v1, -inf  ;;  %v640_v7 = vld [vmem:[%s875_s0 + $0x60] sm:$0xff]  ;;  %v645_v8 = vld [vmem:[%s875_s0 + $0x50] sm:$0xff] }
   0x3   :  { %v81_v5 = vsel %vm47_vm0, %v624_v2, -inf  ;;  %94 = vmax.xlane.f32.xlu0 %v93_v3  ;;  %88 = vmax.xlane.f32.xlu1 %v87_v4 }
   0x4   :  { %82 = vmax.xlane.f32.xlu2 %v81_v5 }
   0x5   :  { %8 = vsyncpa [#allocation3], 0  ;;  %522 = vset.pattern.permute.xlu2 %v587_v9  ;;  %v90_v10 = vsel %vm47_vm0, %v635_v6, -inf  ;;  %v84_v11 = vsel %vm47_vm0, %v640_v7, -inf  ;;  %v78_v12 = vsel %vm47_vm0, %v645_v8, -inf  ;;  %v656_v13 = vld [vmem:[%s875_s0 + $0x48] sm:$0xff] }
   0x6   :  { %v661_v14 = vld [vmem:[%s875_s0 + $0x30] sm:$0xff]  ;;  %v666_v15 = vld [vmem:[%s875_s0 + $0x40] sm:$0xff]  ;;  %v75_v16 = vsel %vm47_vm0, %v656_v13, -inf  ;;  %v677_v19 = vld [vmem:[%s875_s0 + $0x28] sm:$0xff]  ;;  %s590_s22 = smov [#allocation2]   ;;  %s402_s26 = sshll.u32 %s878_s3, 4  ;;  %s403_s26 = int_to_ptr.hbm [resolvable:$true] %s402_s26 }
   0x7   :  { %v66_v17 = vsel %vm47_vm0, %v661_v14, -inf  ;;  %v72_v18 = vsel %vm47_vm0, %v666_v15, -inf  ;;  %v682_v20 = vld [vmem:[%s875_s0 + $0x38] sm:$0xff]  ;;  %v63_v21 = vsel %vm47_vm0, %v677_v19, -inf  ;;  %v696_v24 = vld [vmem:[%s875_s0 + $0x20] sm:$0xff]  ;;  %v705_v27 = vld [vmem:[%s875_s0 + $0x10] sm:$0xff] }
   0x8   :  { %v69_v22 = vsel %vm47_vm0, %v682_v20, -inf  ;;  %v691_v23 = vld [vmem:[%s875_s0 + $0x18] sm:$0xff]  ;;  %v60_v26 = vsel %vm47_vm0, %v696_v24, -inf  ;;  %v54_v28 = vsel %vm47_vm0, %v705_v27, -inf  ;;  %v41_v30 = vld [vmem:[%s876_s1 + $0x50] sm:$0xff]  ;;  %v40_v32 = vld [vmem:[%s876_s1 + $0x48] sm:$0xff] }
   0x9   :  { %v57_v25 = vsel %vm47_vm0, %v691_v23, -inf  ;;  %v46_v29 = vld [vmem:[%s876_s1 + $0x78] sm:$0xff]  ;;  %v45_v31 = vld [vmem:[%s876_s1 + $0x70] sm:$0xff]  ;;  %v39_v33 = vld [vmem:[%s876_s1 + $0x40] sm:$0xff]  ;;  %s400_s23 = sshll.u32 %s590_s22, 4  ;;  %s401_s23 = int_to_ptr.vmem [resolvable:$true] %s400_s23 }
   0xa   :  { %v44_v34 = vld [vmem:[%s876_s1 + $0x68] sm:$0xff]  ;;  %v43_v35 = vld [vmem:[%s876_s1 + $0x60] sm:$0xff]  ;;  %v42_v36 = vld [vmem:[%s876_s1 + $0x58] sm:$0xff] }
   0xb   :  { %91 = vmax.xlane.f32.xlu0 %v90_v10  ;;  %85 = vmax.xlane.f32.xlu1 %v84_v11  ;;  %v38_v37 = vld [vmem:[%s876_s1 + $0x38] sm:$0xff]  ;;  %v739_v38 = vld [vmem:[%s875_s0 + $0x8] sm:$0xff]  ;;  %v37_v39 = vld [vmem:[%s876_s1 + $0x30] sm:$0xff] }
   0xc   :  { %79 = vmax.xlane.f32.xlu2 %v78_v12  ;;  %v51_v40 = vsel %vm47_vm0, %v739_v38, -inf  ;;  %v749_v41 = vld [vmem:[%s875_s0] sm:$0xff]  ;;  %v36_v43 = vld [vmem:[%s876_s1 + $0x28] sm:$0xff]  ;;  %v34_v44 = vld [vmem:[%s876_s1 + $0x18] sm:$0xff] }
   0xd   :  { %v48_v42 = vsel %vm47_vm0, %v749_v41, -inf  ;;  %v33_v50 = vld [vmem:[%s876_s1 + $0x10] sm:$0xff]  ;;  %v32_v51 = vld [vmem:[%s876_s1 + $0x8] sm:$0xff]  ;;  %v35_v52 = vld [vmem:[%s876_s1 + $0x20] sm:$0xff] }
   0xe   :  { %v31_v60 = vld [vmem:[%s876_s1] sm:$0xff] }
  0x13   :  { %76 = vmax.xlane.f32.xlu0 %v75_v16  ;;  %67 = vmax.xlane.f32.xlu1 %v66_v17 }
  0x14   :  { %73 = vmax.xlane.f32.xlu2 %v72_v18 }
  0x1b   :  { %64 = vmax.xlane.f32.xlu0 %v63_v21 }
  0x1c   :  { %70 = vmax.xlane.f32.xlu2 %v69_v22 }
  0x23   :  { %58 = vmax.xlane.f32.xlu0 %v57_v25 }
  0x24   :  { %61 = vmax.xlane.f32.xlu2 %v60_v26  ;;  %v144_v26 = vlaneseq }
  0x2c   :  { %55 = vmax.xlane.f32.xlu2 %v54_v28  ;;  %192 = vperm.xlu1 %520, %v46_v29  }
  0x34   :  { %177 = vperm.xlu1 %520, %v41_v30  }
  0x37   :  { %189 = vperm.xlu0 %521, %v45_v31  }
  0x3c   :  { %174 = vperm.xlu1 %520, %v40_v32  }
  0x3f   :  { %171 = vperm.xlu0 %521, %v39_v33  }
  0x44   :  { %186 = vperm.xlu2 %522, %v44_v34  }
  0x4c   :  { %183 = vperm.xlu2 %522, %v43_v35  }
  0x54   :  { %180 = vperm.xlu2 %522, %v42_v36  }
  0x5c   :  { %168 = vperm.xlu2 %522, %v38_v37  }
  0x64   :  { %165 = vperm.xlu2 %522, %v37_v39  }
  0x66   :  { %52 = vmax.xlane.f32.xlu1 %v51_v40 }
  0x69   :  { %49 = vmax.xlane.f32.xlu0 %v48_v42 }
  0x6c   :  { %162 = vperm.xlu2 %522, %v36_v43  }
  0x74   :  { %156 = vperm.xlu2 %522, %v34_v44  }
  0x76   :  { %v95_v45 = vpop.xlane.xlu0 %94  ;;  %v89_v46 = vpop.xlane.xlu1 %88 }
  0x77   :  { %v111_v47 = vsub.f32 %v614_v0, %v95_v45  ;;  %v83_v48 = vpop.xlane.xlu2 %82  ;;  %v109_v54 = vsub.f32 %v619_v1, %v89_v46 }
  0x78   :  { %v107_v63 = vsub.f32 %v624_v2, %v83_v48 }
  0x79   :  { %v142_v49 = vmul.f32 1.442695, %v111_v47  ;;  %v138_v61 = vmul.f32 1.442695, %v109_v54 }
  0x7a   :  { %v134_v4 = vmul.f32 1.442695, %v107_v63 }
  0x7b   :  { %523 = vpow2.f32 %v142_v49 }
  0x7c   :  { %153 = vperm.xlu2 %522, %v33_v50  }
  0x7d   :  { %150 = vperm.xlu0 %521, %v32_v51  }
  0x7e   :  { %v92_v53 = vpop.xlane.xlu0 %91  ;;  %v86_v57 = vpop.xlane.xlu1 %85 }
  0x7f   :  { %v110_v55 = vsub.f32 %v635_v6, %v92_v53  ;;  %v80_v56 = vpop.xlane.xlu2 %79  ;;  %159 = vperm.xlu1 %520, %v35_v52   ;;  %v108_v62 = vsub.f32 %v640_v7, %v86_v57 }
  0x80   :  { %v106_v5 = vsub.f32 %v645_v8, %v80_v56 }
  0x81   :  { %v524_v58 = vpop.eup %523  ;;  %v140_v59 = vmul.f32 1.442695, %v110_v55  ;;  %v136_v0 = vmul.f32 1.442695, %v108_v62 }
  0x82   :  { %411 = vmatpush.xpose.msk.msra.mxu0 %vm47_vm0, %v524_v58  ;;  %v132_v10 = vmul.f32 1.442695, %v106_v5 }
  0x83   :  { %525 = vpow2.f32 %v140_v59 }
  0x84   :  { %147 = vperm.xlu2 %522, %v31_v60   ;;  %527 = vpow2.f32 %v138_v61 }
  0x85   :  { %529 = vpow2.f32 %v136_v0 }
  0x86   :  { %v77_v6 = vpop.xlane.xlu0 %76  ;;  %531 = vpow2.f32 %v134_v4  ;;  %v68_v21 = vpop.xlane.xlu1 %67 }
  0x87   :  { %v74_v1 = vpop.xlane.xlu2 %73  ;;  %v105_v7 = vsub.f32 %v656_v13, %v77_v6  ;;  %533 = vpow2.f32 %v132_v10  ;;  %v102_v29 = vsub.f32 %v661_v14, %v68_v21 }
  0x88   :  { %v104_v12 = vsub.f32 %v666_v15, %v74_v1 }
  0x89   :  { %v526_v3 = vpop.eup %525  ;;  %v130_v8 = vmul.f32 1.442695, %v105_v7  ;;  %v124_v32 = vmul.f32 1.442695, %v102_v29 }
  0x8a   :  { %412 = vmatpush.xpose.msk.msra.mxu0 %vm47_vm0, %v526_v3  ;;  %v779_v9 = vpop.eup %527  ;;  %v128_v17 = vmul.f32 1.442695, %v104_v12 }
  0x8b   :  { %v784_v11 = vpop.eup %529  ;;  %535 = vpow2.f32 %v130_v8  ;;  %v588_v8 = vmov 1.0  }
  0x8c   :  { %v789_v16 = vpop.eup %531  ;;  %537 = vpow2.f32 %v128_v17 }
  0x8d   :  { %v794_v22 = vpop.eup %533 }
  0x8e   :  { %413 = vmatpush.xpose.msk.msra.mxu0 %vm47_vm0, %v779_v9  ;;  %v65_v13 = vpop.xlane.xlu0 %64 }
  0x8f   :  { %v71_v2 = vpop.xlane.xlu2 %70  ;;  %v101_v33 = vsub.f32 %v677_v19, %v65_v13 }
  0x90   :  { %v103_v18 = vsub.f32 %v682_v20, %v71_v2  ;;  %v801_v20 = vand.u32 127, %v144_v26 }
  0x91   :  { %v798_v28 = vpop.eup %535  ;;  %v122_v39 = vmul.f32 1.442695, %v101_v33 }
  0x92   :  { %414 = vmatpush.xpose.msk.msra.mxu0 %vm47_vm0, %v784_v11  ;;  %v126_v15 = vmul.f32 1.442695, %v103_v18  ;;  %v538_v31 = vpop.eup %537 }
  0x94   :  { %539 = vpow2.f32 %v126_v15 }
  0x95   :  { %541 = vpow2.f32 %v124_v32 }
  0x96   :  { %415 = vmatpush.xpose.msk.msra.mxu0 %vm47_vm0, %v789_v16  ;;  %v59_v35 = vpop.xlane.xlu0 %58  ;;  %543 = vpow2.f32 %v122_v39 }
  0x97   :  { %v62_v25 = vpop.xlane.xlu2 %61  ;;  %v99_v19 = vsub.f32 %v691_v23, %v59_v35 }
  0x98   :  { %v100_v37 = vsub.f32 %v696_v24, %v62_v25 }
  0x99   :  { %v118_v24 = vmul.f32 1.442695, %v99_v19 }
  0x9a   :  { %416 = vmatpush.xpose.msk.msra.mxu0 %vm47_vm0, %v794_v22  ;;  %v540_v14 = vpop.eup %539  ;;  %v120_v40 = vmul.f32 1.442695, %v100_v37 }
  0x9b   :  { %v542_v43 = vpop.eup %541 }
  0x9c   :  { %545 = vpow2.f32 %v120_v40  ;;  %v544_v47 = vpop.eup %543 }
  0x9d   :  { %547 = vpow2.f32 %v118_v24 }
  0x9e   :  { %417 = vmatpush.xpose.msk.msra.mxu0 %vm47_vm0, %v798_v28  ;;  %v193_v30 = vpop.permute.xlu1 %192 }
  0x9f   :  { %vm209_vm1 = vcmp.eq.s32.totalorder %v801_v20, %v193_v30  ;;  %v56_v34 = vpop.xlane.xlu2 %55 }
  0xa0   :  { %v225_v36 = vsel %vm209_vm1, %v524_v58, 0.0  ;;  %v98_v44 = vsub.f32 %v705_v27, %v56_v34 }
  0xa1   :  { %428 = vmatpush.xpose.msk.msra.mxu1 %vm47_vm0, %v225_v36 }
  0xa2   :  { %418 = vmatpush.xpose.msk.msra.mxu0 %vm47_vm0, %v538_v31  ;;  %v116_v48 = vmul.f32 1.442695, %v98_v44  ;;  %v546_v23 = vpop.eup %545 }
  0xa3   :  { %v548_v52 = vpop.eup %547 }
  0xa4   :  { %549 = vpow2.f32 %v116_v48 }
  0xa6   :  { %419 = vmatpush.xpose.msk.msra.mxu0 %vm47_vm0, %v540_v14  ;;  %v178_v50 = vpop.permute.xlu1 %177 }
  0xa7   :  { %v187_v42 = vpop.permute.xlu2 %186  ;;  %vm204_vm6 = vcmp.eq.s32.totalorder %v801_v20, %v178_v50 }
  0xa8   :  { %vm207_vm3 = vcmp.eq.s32.totalorder %v801_v20, %v187_v42  ;;  %v220_v57 = vsel %vm204_vm6, %v794_v22, 0.0 }
  0xa9   :  { %v190_v45 = vpop.permute.xlu0 %189  ;;  %v223_v49 = vsel %vm207_vm3, %v779_v9, 0.0 }
  0xaa   :  { %vm208_vm2 = vcmp.eq.s32.totalorder %v801_v20, %v190_v45  ;;  %420 = vmatpush.xpose.msk.msra.mxu0 %vm47_vm0, %v542_v43  ;;  %v550_v53 = vpop.eup %549 }
  0xab   :  { %v224_v46 = vsel %vm208_vm2, %v526_v3, 0.0 }
  0xac   :  { %429 = vmatpush.xpose.msk.msra.mxu1 %vm47_vm0, %v224_v46 }
  0xae   :  { %421 = vmatpush.xpose.msk.msra.mxu0 %vm47_vm0, %v544_v47  ;;  %v175_v56 = vpop.permute.xlu1 %174 }
  0xaf   :  { %v184_v27 = vpop.permute.xlu2 %183  ;;  %vm203_vm7 = vcmp.eq.s32.totalorder %v801_v20, %v175_v56 }
  0xb0   :  { %vm206_vm4 = vcmp.eq.s32.totalorder %v801_v20, %v184_v27  ;;  %430 = vmatpush.xpose.msk.msra.mxu1 %vm47_vm0, %v223_v49  ;;  %v219_v60 = vsel %vm203_vm7, %v798_v28, 0.0 }
  0xb1   :  { %v222_v51 = vsel %vm206_vm4, %v784_v11, 0.0  ;;  %v172_v58 = vpop.permute.xlu0 %171 }
  0xb2   :  { %422 = vmatpush.xpose.msk.msra.mxu0 %vm47_vm0, %v546_v23  ;;  %vm202_vm8 = vcmp.eq.s32.totalorder %v801_v20, %v172_v58 }
  0xb3   :  { %v218_v61 = vsel %vm202_vm8, %v538_v31, 0.0 }
  0xb4   :  { %431 = vmatpush.xpose.msk.msra.mxu1 %vm47_vm0, %v222_v51 }
  0xb6   :  { %423 = vmatpush.xpose.msk.msra.mxu0 %vm47_vm0, %v548_v52 }
  0xb7   :  { %v181_v54 = vpop.permute.xlu2 %180 }
  0xb8   :  { %vm205_vm5 = vcmp.eq.s32.totalorder %v801_v20, %v181_v54 }
  0xb9   :  { %v221_v55 = vsel %vm205_vm5, %v789_v16, 0.0 }
  0xba   :  { %432 = vmatpush.xpose.msk.msra.mxu1 %vm47_vm0, %v221_v55  ;;  %424 = vmatpush.xpose.msk.msra.mxu0 %vm47_vm0, %v550_v53 }
  0xbe   :  { %433 = vmatpush.xpose.msk.msra.mxu1 %vm47_vm0, %v220_v57 }
  0xbf   :  { %v169_v59 = vpop.permute.xlu2 %168 }
  0xc0   :  { %vm201_vm9 = vcmp.eq.s32.totalorder %v801_v20, %v169_v59 }
  0xc1   :  { %v217_v63 = vsel %vm201_vm9, %v540_v14, 0.0 }
  0xc2   :  { %434 = vmatpush.xpose.msk.msra.mxu1 %vm47_vm0, %v219_v60 }
  0xc6   :  { %435 = vmatpush.xpose.msk.msra.mxu1 %vm47_vm0, %v218_v61 }
  0xc7   :  { %v166_v62 = vpop.permute.xlu2 %165 }
  0xc8   :  { %vm200_vm10 = vcmp.eq.s32.totalorder %v801_v20, %v166_v62 }
  0xc9   :  { %v216_v0 = vsel %vm200_vm10, %v542_v43, 0.0 }
  0xca   :  { %436 = vmatpush.xpose.msk.msra.mxu1 %vm47_vm0, %v217_v63 }
  0xce   :  { %437 = vmatpush.xpose.msk.msra.mxu1 %vm47_vm0, %v216_v0 }
  0xcf   :  { %v163_v1 = vpop.permute.xlu2 %162 }
  0xd0   :  { %vm199_vm11 = vcmp.eq.s32.totalorder %v801_v20, %v163_v1  ;;  %v589_v1 = vmov 0.7  }
  0xd1   :  { %v215_v3 = vsel %vm199_vm11, %v544_v47, 0.0 }
  0xd2   :  { %438 = vmatpush.xpose.msk.msra.mxu1 %vm47_vm0, %v215_v3 }
  0xd7   :  { %v157_v12 = vpop.permute.xlu2 %156 }
  0xd8   :  { %vm197_vm13 = vcmp.eq.s32.totalorder %v801_v20, %v157_v12 }
  0xd9   :  { %v53_v4 = vpop.xlane.xlu1 %52 }
  0xda   :  { %v97_v5 = vsub.f32 %v739_v38, %v53_v4 }
  0xdc   :  { %v114_v6 = vmul.f32 1.442695, %v97_v5  ;;  %v50_v9 = vpop.xlane.xlu0 %49 }
  0xdd   :  { %v96_v10 = vsub.f32 %v749_v41, %v50_v9  ;;  %v213_v41 = vsel %vm197_vm13, %v548_v52, 0.0 }
  0xde   :  { %551 = vpow2.f32 %v114_v6 }
  0xdf   :  { %v112_v7 = vmul.f32 1.442695, %v96_v10  ;;  %v154_v38 = vpop.permute.xlu2 %153 }
  0xe0   :  { %vm196_vm14 = vcmp.eq.s32.totalorder %v801_v20, %v154_v38 }
  0xe1   :  { %553 = vpow2.f32 %v112_v7  ;;  %v212_v13 = vsel %vm196_vm14, %v550_v53, 0.0 }
  0xe4   :  { %v552_v2 = vpop.eup %551 }
  0xe5   :  { %425 = vmatpush.xpose.msk.msra.mxu0 %vm47_vm0, %v552_v2 }
  0xe7   :  { %v554_v11 = vpop.eup %553  ;;  %v148_v21 = vpop.permute.xlu2 %147 }
  0xe8   :  { %vm194_vm1 = vcmp.eq.s32.totalorder %v801_v20, %v148_v21 }
  0xe9   :  { %426 = vmatpush.xpose.msk.msra.mxu0 %vm47_vm0, %v554_v11  ;;  %v210_v25 = vsel %vm194_vm1, %v554_v11, 0.0 }
  0xec   :  { %427 = vmatmul.msk.f32.vlgmr.msra.gmra.mxu0 %vm47_vm0, %v588_v8 }
  0xef   :  { %v151_v18 = vpop.permute.xlu0 %150 }
  0xf0   :  { %vm195_vm15 = vcmp.eq.s32.totalorder %v801_v20, %v151_v18 }
  0xf1   :  { %v160_v16 = vpop.permute.xlu1 %159  ;;  %v211_v22 = vsel %vm195_vm15, %v552_v2, 0.0 }
  0xf2   :  { %vm198_vm12 = vcmp.eq.s32.totalorder %v801_v20, %v160_v16 }
  0xf3   :  { %v214_v17 = vsel %vm198_vm12, %v546_v23, 0.0 }
  0xf4   :  { %439 = vmatpush.xpose.msk.msra.mxu1 %vm47_vm0, %v214_v17 }
  0xf8   :  { %440 = vmatpush.xpose.msk.msra.mxu1 %vm47_vm0, %v213_v41 }
  0xfc   :  { %441 = vmatpush.xpose.msk.msra.mxu1 %vm47_vm0, %v212_v13 }
 0x100   :  { %442 = vmatpush.xpose.msk.msra.mxu1 %vm47_vm0, %v211_v22 }
 0x104   :  { %443 = vmatpush.xpose.msk.msra.mxu1 %vm47_vm0, %v210_v25 }
 0x107   :  { %444 = vmatmul.msk.f32.vlgmr.msra.gmra.mxu1 %vm47_vm0, %v588_v8 }
 0x169   :  { %v294_v26 = vpop.f32.mrf.mxu0 }
 0x16a   :  { %555 = vrcp.f32 %v294_v26  ;;  %vm370_vm2 = vweird.f32 %v294_v26  ;;  %v376_v32 = vand.u32 2147483648, %v294_v26  ;;  %v374_v33 = vand.u32 2147483647, %v294_v26 }
 0x16b   :  { %557 = vrcp.f32 %v589_v1 }
 0x16c   :  { %v377_v34 = vor.u32 1.1754944e-38, %v376_v32  ;;  %vm375_vm5 = vcmp.eq.f32.partialorder %v374_v33, 8.507059e+37 }
 0x170   :  { %v556_v15 = vpop.eup %555 }
 0x171   :  { %v366_v28 = vmul.f32 %v556_v15, %v294_v26  ;;  %vm371_vm3 = vweird.f32 %v556_v15  ;;  %v558_v9 = vpop.eup %557 }
 0x172   :  { %vm372_vm4 = vmor %vm370_vm2, %vm371_vm3  ;;  %v385_v11 = vmul.f32 0.7, %v558_v9  ;;  %vm389_vm13 = vweird.f32 %v558_v9 }
 0x173   :  { %v367_v29 = vsub.f32 1.0, %v366_v28 }
 0x174   :  { %v386_v38 = vsub.f32 1.0, %v385_v11 }
 0x175   :  { %v368_v30 = vmul.f32 %v556_v15, %v367_v29  ;;  %v392_v29 = vld [vmem:[%s877_s2] sm:$0x1] }
 0x176   :  { %v387_v17 = vmul.f32 %v558_v9, %v386_v38 }
 0x177   :  { %v369_v31 = vadd.f32 %v556_v15, %v368_v30 }
 0x178   :  { %v388_v13 = vadd.f32 %v558_v9, %v387_v17 }
 0x179   :  { %v373_v20 = vsel %vm372_vm4, %v556_v15, %v369_v31 }
 0x17a   :  { %v378_v36 = vsel %vm375_vm5, %v377_v34, %v373_v20  ;;  %v390_v15 = vsel %vm389_vm13, %v558_v9, %v388_v13 }
 0x184   :  { %v362_v35 = vpop.f32.mrf.mxu1 }
 0x185   :  { %v379_v37 = vmul.f32 %v378_v36, %v362_v35 }
 0x187   :  { %v380_v14 = vmax.f32 %v379_v37, 1e-09 }
 0x189   :  { %v859_v39 = vmin.f32 %v380_v14, 1.0 }
 0x18b   :  { %v449_v40 = vand.u32 2147483647, %v859_v39  ;;  %vm496_vm10 = vcmp.lt.f32.partialorder %v859_v39, 0  ;;  %vm497_vm11 = vcmp.eq.f32.partialorder %v859_v39, 0  ;;  %vm509_vm14 = vcmp.ne.f32.partialorder %v859_v39, %v859_v39 }
 0x18c   :  { %vm498_vm15 = vcmp.eq.f32.partialorder %v859_v39, 1065353216 }
 0x18d   :  { %v455_v19 = vand.u32 8388607, %v449_v40  ;;  %v451_v48 = vand.u32 2139095040, %v449_v40  ;;  %vm489_vm6 = vweird.f32 %v449_v40  ;;  %vm488_vm7 = vcmp.lt.f32.partialorder %v449_v40, 0.0 }
 0x18e   :  { %vm487_vm8 = vcmp.eq.f32.partialorder %v449_v40, 0.0  ;;  %vm486_vm9 = vcmp.eq.f32.partialorder %v449_v40, 1.0  ;;  %vm501_vm12 = vcmp.eq.f32.partialorder %v449_v40, 2139095040 }
 0x18f   :  { %v456_v42 = vor.u32 8388608, %v455_v19  ;;  %v452_v51 = vshrl.u32 %v451_v48, 23 }
 0x191   :  { %v458_v43 = vand.u32 8388607, %v456_v42  ;;  %v514_v56 = vadd.s32 4294967169, %v452_v51 }
 0x193   :  { %v459_v44 = vor.u32 1065353216, %v458_v43  ;;  %v463_v61 = vadd.s32 1, %v514_v56 }
 0x195   :  { %vm460_vm0 = vcmp.ge.f32.partialorder %v459_v44, 1.4142135  ;;  %v461_v45 = vmul.f32 0.5, %v459_v44 }
 0x196   :  { %v464_v3 = vsel %vm460_vm0, %v463_v61, %v514_v56 }
 0x197   :  { %v462_v24 = vsel %vm460_vm0, %v461_v45, %v459_v44  ;;  %v484_v6 = vcvt.s32.f32 %v464_v3 }
 0x198   :  { %v515_v46 = vadd.f32 -1.0, %v462_v24 }
 0x19a   :  { %v466_v47 = vmul.f32 %v515_v46, %v515_v46 }
 0x19c   :  { %v467_v23 = vmul.f32 0.12621109, %v466_v47  ;;  %v469_v49 = vmul.f32 -0.20706727, %v466_v47 }
 0x19e   :  { %v468_v27 = vadd.f32 0.21545328, %v467_v23  ;;  %v470_v50 = vadd.f32 -0.23896284, %v469_v49 }
 0x1a0   :  { %v471_v52 = vmul.f32 %v468_v27, %v466_v47  ;;  %v473_v53 = vmul.f32 %v470_v50, %v466_v47 }
 0x1a2   :  { %v472_v54 = vadd.f32 0.28795174, %v471_v52  ;;  %v474_v55 = vadd.f32 -0.3607037, %v473_v53 }
 0x1a4   :  { %v475_v57 = vmul.f32 %v472_v54, %v466_v47  ;;  %v477_v58 = vmul.f32 %v474_v55, %v466_v47 }
 0x1a6   :  { %v476_v59 = vadd.f32 0.48090908, %v475_v57  ;;  %v478_v60 = vadd.f32 -0.72134733, %v477_v58 }
 0x1a8   :  { %v479_v62 = vmul.f32 %v476_v59, %v466_v47  ;;  %v481_v0 = vmul.f32 %v515_v46, %v478_v60 }
 0x1aa   :  { %v480_v63 = vadd.f32 1.442695, %v479_v62 }
 0x1ac   :  { %v482_v4 = vadd.f32 %v481_v0, %v480_v63 }
 0x1ae   :  { %v483_v5 = vmul.f32 %v515_v46, %v482_v4 }
 0x1b0   :  { %v485_v10 = vadd.f32 %v484_v6, %v483_v5 }
 0x1b2   :  { %v490_v7 = vsel %vm489_vm6, %v449_v40, %v485_v10 }
 0x1b3   :  { %v491_v2 = vsel %vm488_vm7, nan, %v490_v7 }
 0x1b4   :  { %v492_v12 = vsel %vm487_vm8, -inf, %v491_v2 }
 0x1b5   :  { %v493_v8 = vsel %vm486_vm9, 0.0, %v492_v12 }
 0x1b6   :  { %v494_v16 = vmul.f32 0.7, %v493_v8 }
 0x1b8   :  { %559 = vpow2.f32 %v494_v16 }
 0x1be   :  { %v560_v41 = vpop.eup %559 }
 0x1bf   :  { %v502_v18 = vsel %vm496_vm10, 2143289344, %v560_v41 }
 0x1c0   :  { %v503_v21 = vsel %vm497_vm11, 0, %v502_v18 }
 0x1c1   :  { %v508_v22 = vsel %vm501_vm12, 2139095040, %v503_v21 }
 0x1c2   :  { %v512_v25 = vsel %vm509_vm14, 2143289344, %v508_v22 }
 0x1c3   :  { %v513_v26 = vsel %vm498_vm15, 1065353216, %v512_v25 }
 0x1c4   :  { %v383_v28 = vsub.f32 1.0, %v513_v26 }
 0x1c6   :  { %v391_v30 = vmul.f32 %v390_v15, %v383_v28 }
 0x1c8   :  { %v393_v31 = vmul.f32 %v392_v29, %v391_v30 }
 0x1ca   :  { %394 = vst [vmem:[#allocation2] sm:$0x1] %v393_v31 }
 0x1cb   :  { %405 = dma.vmem_to_hbm [thread:$0]  %s401_s23, 16, %s403_s26, [#allocation3]  }
 0x1cc   :  { %585 = dma.done.wait [#allocation3], 16  }
 0x1cd   :  { %586 = vsyncadd [#allocation3], 4294967280 }
 0x1ce   :  { %410 = vsyncpa [#allocation3], 1 }

</bundles_post_ra>
